<compile_context>
chip_gen: v7x
topology: tpu7x:2x2x1
jax: 0.10.0
libtpu: 0.0.40
codegen_flags: <defaults>
</compile_context>

<pallas_src>
import functools

import jax
import jax.numpy as jnp
from jax.experimental import pallas as pl
from jax.experimental.pallas import tpu as pltpu


def _sublane_multiple(dtype):
    # Sublane tiling quantum: 8 for 4-byte, 16 for 2-byte, 32 for 1-byte dtypes.
    return max(8, 32 // jnp.dtype(dtype).itemsize)


def _pick_row_block(R, per_row_bytes, budget_bytes, sub):
    """Largest divisor of R that fits the VMEM budget and keeps sublane alignment."""
    cap = max(1, budget_bytes // max(per_row_bytes, 1))
    if R <= cap:
        return R                       # whole row extent == full dim (always legal)
    best = 0
    r = sub
    while r <= cap:
        if R % r == 0:
            best = r
        r += sub
    if best:
        return best
    # No sublane-aligned divisor within the soft budget: take the smallest
    # aligned divisor (may exceed the budget slightly) or fall back to full R.
    r = sub
    while r < R:
        if R % r == 0:
            return r
        r += sub
    return R


def cape_kernel(w_ref, x_ref, o_ref, xp_ref, *, K, pad, p, halo, L, L_out):
    """One row block: depthwise conv along s on the flattened (s*p) lane axis.

    w_ref  : VMEM (K, rb, 1)              per-row tap weights (f32)
    x_ref  : VMEM (rb, L)                 input rows, L = s * p
    o_ref  : VMEM (rb, L_out)             output rows, L_out = s_out * p
    xp_ref : VMEM (rb, halo + L + pad*p)  zero-haloed f32 scratch
    """
    # Zero the whole scratch with one aligned full-width fill (the halo columns
    # must be re-zeroed every step: each TensorCore owns a private scratch under
    # megacore sharding), then drop the input into the interior, which starts at
    # a 128-aligned lane offset.
    xp_ref[...] = jnp.zeros(xp_ref.shape, xp_ref.dtype)
    xp_ref[:, halo:halo + L] = x_ref[...].astype(xp_ref.dtype)

    w = w_ref[...]                     # (K, rb, 1); broadcasts across lanes
    base = halo - pad * p
    # out[t, j] = sum_k w[k] * x[t + k - pad, j]  (zero outside [0, s))
    # In the flat (s*p) index i = t*p + j this is xp[base + k*p + i].
    acc = w[0] * xp_ref[:, base:base + L_out]        # tap 0 initializes acc
    for k in range(1, K):
        off = base + k * p
        acc = acc + w[k] * xp_ref[:, off:off + L_out]
    o_ref[...] = acc.astype(o_ref.dtype)


def cape_forward(x, weight, kernel_size, *, block_budget_bytes=8 * 1024 * 1024):
    """x: (n, c, s, p); weight: (c, 1, K) depthwise Conv1d weights (no bias)."""
    n, c, s, p = x.shape
    K = int(kernel_size)
    pad = K // 2
    s_out = s + 2 * pad - K + 1            # == s for odd K (matches PyTorch)
    R, L, L_out = n * c, s * p, s_out * p

    # Left halo rounded up to a full vreg so the interior store stays aligned;
    # right halo only needs pad*p zero columns.
    halo = 0 if pad == 0 else ((pad * p + 127) // 128) * 128
    W = halo + L + pad * p

    # Free view: (n, c, s, p) -> (n*c, s*p); undone on the output below.
    x2 = x.reshape(R, L)

    # (c, 1, K) depthwise weights -> per-row tap table (K, n*c, 1), f32.
    # Row r = i_n*c + i_c uses channel i_c = r % c.
    w_kc = jnp.transpose(weight.reshape(c, K), (1, 0)).astype(jnp.float32)  # (K, c)
    w_tab = jnp.tile(w_kc, (1, n))[:, :, None]                              # (K, R, 1)

    itemsize = jnp.dtype(x.dtype).itemsize
    # Double-buffered in/out blocks + f32 scratch + f32 accumulator temporaries.
    per_row = (2 * L + 2 * L_out) * itemsize + (W + 3 * L_out) * 4
    rb = _pick_row_block(R, per_row, block_budget_bytes, _sublane_multiple(x.dtype))
    grid = (R // rb,)

    kern = functools.partial(cape_kernel, K=K, pad=pad, p=p, halo=halo,
                             L=L, L_out=L_out)

    out2 = pl.pallas_call(
        kern,
        out_shape=jax.ShapeDtypeStruct((R, L_out), x.dtype),
        grid=grid,
        in_specs=[
            pl.BlockSpec((K, rb, 1), lambda i: (0, i, 0)),
            pl.BlockSpec((rb, L), lambda i: (i, 0)),
        ],
        out_specs=pl.BlockSpec((rb, L_out), lambda i: (i, 0)),
        scratch_shapes=[pltpu.VMEM((rb, W), jnp.float32)],
        compiler_params=pltpu.CompilerParams(
            dimension_semantics=("parallel",),
            vmem_limit_bytes=32 * 1024 * 1024),
    )(w_tab, x2)

    return out2.reshape(n, c, s_out, p)


def cape_reference(x, weight, kernel_size):
    """Pure-JAX reference mirroring the PyTorch module exactly."""
    n, c, s, p = x.shape
    pad = kernel_size // 2
    # (n c s p) -> ((n p) c s)
    xr = jnp.transpose(x, (0, 3, 1, 2)).reshape(n * p, c, s)
    out = jax.lax.conv_general_dilated(
        xr, weight,
        window_strides=(1,),
        padding=[(pad, pad)],
        dimension_numbers=("NCH", "OIH", "NCH"),
        feature_group_count=c,
    )
    s_out = out.shape[-1]
    # ((n p) c s) -> (n c s p)
    return jnp.transpose(out.reshape(n, p, c, s_out), (0, 2, 3, 1))


if __name__ == "__main__":
    n, c, s, p = 2, 4, 16, 16
    kernel_size = 3

    key = jax.random.PRNGKey(0)
    kx, kw = jax.random.split(key)
    x = jax.random.normal(kx, (n, c, s, p), dtype=jnp.float32)
    # Depthwise Conv1d weight shape: (out_channels, in_channels/groups, K)
    weight = jax.random.normal(kw, (c, 1, kernel_size), dtype=jnp.float32) * 0.1

    out = cape_forward(x, weight, kernel_size)
    out = jax.block_until_ready(out)

    ref = cape_reference(x, weight, kernel_size)
    assert out.shape == ref.shape, (out.shape, ref.shape)
    assert jnp.allclose(out, ref, atol=1e-5, rtol=1e-5), "mismatch vs reference"

    print("KERNEL_OK")
</pallas_src>

<mosaic_0001>
module attributes {stable_mosaic.version = 11 : i64} {
  func.func @cape_kernel(%arg0: i32, %arg1: memref<3x8x1xf32, #tpu.memory_space<vmem>>, %arg2: memref<8x256xf32, #tpu.memory_space<vmem>>, %arg3: memref<8x256xf32, #tpu.memory_space<vmem>>, %arg4: memref<8x400xf32, #tpu.memory_space<vmem>>) attributes {dimension_semantics = [#tpu.dimension_semantics<parallel>], iteration_bounds = array<i64: 1>, scalar_prefetch = 0 : i64, scratch_operands = 1 : i64, tpu.core_type = #tpu.core_type<tc>, window_params = [{transform_indices = @transform_0, window_bounds = array<i64: 3, 8, 1>}, {transform_indices = @transform_1, window_bounds = array<i64: 8, 256>}, {transform_indices = @transform_2, window_bounds = array<i64: 8, 256>}]} {
    %cst = arith.constant 0.000000e+00 : f32
    %0 = vector.broadcast %cst : f32 to vector<8x400xf32>
    %c0 = arith.constant 0 : index
    %c0_0 = arith.constant 0 : index
    %1 = vector.load %arg4[%c0, %c0_0] : memref<8x400xf32, #tpu.memory_space<vmem>>, vector<8x400xf32>
    tpu.vector_store %arg4[%c0, %c0_0], %0 {strides = array<i32>} : memref<8x400xf32, #tpu.memory_space<vmem>>, vector<8x400xf32>,
    %c0_1 = arith.constant 0 : index
    %c0_2 = arith.constant 0 : index
    %2 = vector.load %arg2[%c0_1, %c0_2] : memref<8x256xf32, #tpu.memory_space<vmem>>, vector<8x256xf32>
    %c0_3 = arith.constant 0 : index
    %c128 = arith.constant 128 : index
    %3 = vector.load %arg4[%c0_3, %c128] : memref<8x400xf32, #tpu.memory_space<vmem>>, vector<8x256xf32>
    tpu.vector_store %arg4[%c0_3, %c128], %2 {strides = array<i32>} : memref<8x400xf32, #tpu.memory_space<vmem>>, vector<8x256xf32>,
    %c0_4 = arith.constant 0 : index
    %c0_5 = arith.constant 0 : index
    %c0_6 = arith.constant 0 : index
    %4 = vector.load %arg1[%c0_4, %c0_5, %c0_6] : memref<3x8x1xf32, #tpu.memory_space<vmem>>, vector<3x8x1xf32>
    %5 = vector.extract_strided_slice %4 {offsets = [0, 0, 0], sizes = [1, 8, 1], strides = [1, 1, 1]} : vector<3x8x1xf32> to vector<1x8x1xf32>
    %6 = vector.shape_cast %5 : vector<1x8x1xf32> to vector<8x1xf32>
    %c0_7 = arith.constant 0 : index
    %c112 = arith.constant 112 : index
    %7 = vector.load %arg4[%c0_7, %c112] : memref<8x400xf32, #tpu.memory_space<vmem>>, vector<8x256xf32>
    %8 = vector.broadcast %6 : vector<8x1xf32> to vector<8x256xf32>
    %9 = arith.mulf %8, %7 : vector<8x256xf32>
    %10 = vector.extract_strided_slice %4 {offsets = [1, 0, 0], sizes = [1, 8, 1], strides = [1, 1, 1]} : vector<3x8x1xf32> to vector<1x8x1xf32>
    %11 = vector.shape_cast %10 : vector<1x8x1xf32> to vector<8x1xf32>
    %c0_8 = arith.constant 0 : index
    %c128_9 = arith.constant 128 : index
    %12 = vector.load %arg4[%c0_8, %c128_9] : memref<8x400xf32, #tpu.memory_space<vmem>>, vector<8x256xf32>
    %13 = vector.broadcast %11 : vector<8x1xf32> to vector<8x256xf32>
    %14 = arith.mulf %13, %12 : vector<8x256xf32>
    %15 = arith.addf %9, %14 : vector<8x256xf32>
    %16 = vector.extract_strided_slice %4 {offsets = [2, 0, 0], sizes = [1, 8, 1], strides = [1, 1, 1]} : vector<3x8x1xf32> to vector<1x8x1xf32>
    %17 = vector.shape_cast %16 : vector<1x8x1xf32> to vector<8x1xf32>
    %c0_10 = arith.constant 0 : index
    %c144 = arith.constant 144 : index
    %18 = vector.load %arg4[%c0_10, %c144] : memref<8x400xf32, #tpu.memory_space<vmem>>, vector<8x256xf32>
    %19 = vector.broadcast %17 : vector<8x1xf32> to vector<8x256xf32>
    %20 = arith.mulf %19, %18 : vector<8x256xf32>
    %21 = arith.addf %15, %20 : vector<8x256xf32>
    %c0_11 = arith.constant 0 : index
    %c0_12 = arith.constant 0 : index
    %22 = vector.load %arg3[%c0_11, %c0_12] : memref<8x256xf32, #tpu.memory_space<vmem>>, vector<8x256xf32>
    tpu.vector_store %arg3[%c0_11, %c0_12], %21 {strides = array<i32>} : memref<8x256xf32, #tpu.memory_space<vmem>>, vector<8x256xf32>,
    return
  }
  func.func @transform_0(%arg0: i32) -> (i32, i32, i32) {
    %c0_i32 = arith.constant 0 : i32
    %c0_i32_0 = arith.constant 0 : i32
    %c0_i32_1 = arith.constant 0 : i32
    return %c0_i32, %arg0, %c0_i32_0 : i32, i32, i32
  }
  func.func @transform_1(%arg0: i32) -> (i32, i32) {
    %c0_i32 = arith.constant 0 : i32
    %c0_i32_0 = arith.constant 0 : i32
    return %arg0, %c0_i32 : i32, i32
  }
  func.func @transform_2(%arg0: i32) -> (i32, i32) {
    %c0_i32 = arith.constant 0 : i32
    %c0_i32_0 = arith.constant 0 : i32
    return %arg0, %c0_i32 : i32, i32
  }
}

</mosaic_0001>

<bundles_post_ra>
// kernel: tpu_custom_call.1
= control target key start
LH: loop header
LB: loop body
LE: loop exit
PB: predicated region body
PF: predicated region fallthrough
CT: control target
= control target key end

     0   :  { %vm15_vm0 = vcmask 130048   ;;  %v146_v2 = vmov 0   ;;  %v147_v5 = vmov 0.0   ;;  %s197_s0 = inlined_call_operand.vmem [shape: f32[3,8,1], index: 0, kind: input, shape index: {}]   ;;  %s198_s1 = inlined_call_operand.vmem [shape: f32[8,256], index: 1, kind: input, shape index: {}]   ;;  %s199_s2 = inlined_call_operand.hbm [shape: f32[8,256], index: 2, kind: output, shape index: {}]  }
   0x1   :  { %v22_v0 = vld [vmem:[%s197_s0 + $0x8] sm:$0xff]  ;;  %v21_v1 = vld [vmem:[%s197_s0] sm:$0xff]  ;;  %120 = vset.pattern.permute.xlu0 %v146_v2  ;;  %121 = vset.pattern.permute.xlu1 %v146_v2  ;;  %16 = vst.msk [vmem:[#allocation2 + $0x18] sm:$0xff] %vm15_vm0, %v147_v5 }
   0x2   :  { %v17_v3 = vld [vmem:[%s198_s1] sm:$0xff]  ;;  %v18_v4 = vld [vmem:[%s198_s1 + $0x8] sm:$0xff] }
   0x3   :  { %7 = vsyncpa [#allocation4], 0  ;;  %37 = vperm.xlu0 %120, %v22_v0   ;;  %29 = vperm.xlu1 %121, %v21_v1   ;;  %v23_v6 = vld [vmem:[%s197_s0 + $0x10] sm:$0xff]  ;;  %s148_s19 = smov 112   ;;  %s149_s1 = smov 96   ;;  %vm48_vm1 = vcmask 916480  }
   0x4   :  { %vm76_vm2 = vcmask 785408   ;;  %s150_s0 = smov 16   ;;  %s151_s20 = smov [#allocation3]  }
   0x5   :  { %s106_s21 = sshll.u32 %s151_s20, 4  ;;  %s107_s21 = int_to_ptr.vmem [resolvable:$true] %s106_s21 }
   0x6   :  { %s122_s22 = scalar_lea.vmem %s107_s21, 256  ;;  %p127_p1 = scmp.lt.s32.totalorder %s107_s21, %s107_s21 }
   0x7   :  { %61 = vperm.xlu0 %120, %v23_v6   ;;  %p123_p0 = scmp.ne.s32.totalorder %s107_s21, %s122_s22  ;;  %p128_p2 = scmp.lt.s32.totalorder %s122_s22, %s122_s22 }
   0x8   :  { %v58_v13 = vld [vmem:[#allocation2 + $0x18] sm:$0xff] }
   0x9   :  { %p129_p3 = por %p128_p2, %p127_p1 }
   0xb   :  { %p130_p4 = pnand %p129_p3, %p123_p0 }
  0x82   :  { %v38_v7 = vpop.permute.xlu0 %37  ;;  %v30_v15 = vpop.permute.xlu1 %29 }
  0x83   :  { %v40_v8 = vmul.f32 %v38_v7, %v17_v3  ;;  %v41_v9 = vmul.f32 %v38_v7, %v18_v4  ;;  %v32_v18 = vmul.f32 0.0, %v30_v15  ;;  %v33_v20 = vmul.f32 %v30_v15, %v17_v3 }
  0x84   :  { %v34_v27 = vmul.f32 %v30_v15, %v18_v4 }
  0x85   :  { %46 = vrot.lane.b32.xlu0 %v41_v9, %s148_s19  ;;  %44 = vrot.lane.b32.xlu1 %v40_v8, %s148_s19 }
  0x86   :  { %v62_v10 = vpop.permute.xlu0 %61 }
  0x87   :  { %v64_v11 = vmul.f32 %v62_v10, %v17_v3  ;;  %v65_v12 = vmul.f32 %v62_v10, %v18_v4  ;;  %v66_v14 = vmul.f32 %v62_v10, %v58_v13 }
  0x89   :  { %72 = vrot.lane.b32.xlu0 %v65_v12, %s149_s1  ;;  %70 = vrot.lane.b32.xlu1 %v64_v11, %s149_s1 }
  0x8d   :  { %74 = vrot.lane.b32.xlu1 %v66_v14, %s149_s1 }
  0xf7   :  { %v47_v16 = vpop.permute.xlu0 %46  ;;  %v45_v17 = vpop.permute.xlu1 %44 }
  0xf8   :  { %v49_v19 = vsel %vm48_vm1, %v45_v17, %v47_v16  ;;  %v53_v21 = vadd.f32 %v45_v17, %v32_v18  ;;  %v55_v29 = vadd.f32 %v47_v16, %v34_v27 }
  0xf9   :  { %v54_v22 = vadd.f32 %v49_v19, %v33_v20 }
  0xfb   :  { %v73_v23 = vpop.permute.xlu0 %72  ;;  %v71_v24 = vpop.permute.xlu1 %70 }
  0xfc   :  { %v77_v25 = vsel %vm76_vm2, %v71_v24, %v73_v23  ;;  %v82_v26 = vadd.f32 %v71_v24, %v53_v21 }
  0xfd   :  { %v83_v28 = vadd.f32 %v77_v25, %v54_v22 }
  0xfe   :  { %88 = vrot.lane.b32.xlu0 %v82_v26, %s150_s0 }
  0xff   :  { %v75_v30 = vpop.permute.xlu1 %74  ;;  %90 = vrot.lane.b32.xlu1 %v83_v28, %s150_s0 }
 0x100   :  { %v78_v31 = vsel %vm76_vm2, %v73_v23, %v75_v30 }
 0x101   :  { %v84_v32 = vadd.f32 %v78_v31, %v55_v29 }
 0x103   :  { %92 = vrot.lane.b32.xlu0 %v84_v32, %s150_s0 }
 0x170   :  { %v89_v33 = vpop.permute.xlu0 %88 }
 0x171   :  { %v91_v34 = vpop.permute.xlu1 %90 }
 0x172   :  { %v94_v35 = vsel %vm15_vm0, %v89_v33, %v91_v34 }
 0x173   :  { %98 = vst [vmem:[#allocation3] sm:$0xff] %v94_v35 }
 0x175   :  { %v93_v36 = vpop.permute.xlu0 %92 }
 0x176   :  { %v95_v37 = vsel %vm15_vm0, %v91_v34, %v93_v36 }
 0x177   :  { %99 = vst [vmem:[#allocation3 + $0x8] sm:$0xff] %v95_v37 }
 0x178   :  { %133 = shalt.err (!%p130_p4)
}
 0x179   :  { %s134_s25 = scalar_lea.hbm %s199_s2, 256 }
 0x17a   :  { %p135_p5 = scmp.ne.s32.totalorder %s199_s2, %s134_s25  ;;  %p138_p6 = scmp.lt.u32.totalorder %s134_s25, %s199_s2 }
 0x17c   :  { %p140_p7 = pnand %p138_p6, %p135_p5 }
 0x17e   :  { %143 = shalt.err (!%p140_p7)
}
 0x17f   :  { %109 = dma.vmem_to_hbm [thread:$0]  %s107_s21, 256, %s199_s2, [#allocation4]  }
 0x180   :  { %144 = dma.done.wait [#allocation4], 256  }
 0x181   :  { %145 = vsyncadd [#allocation4], 4294967040 }
 0x182   :  { %113 = vsyncpa [#allocation4], 1 }

</bundles_post_ra>
